<compile_context>
chip_gen: v6e
topology: v6e:2x2x1
jax: 0.10.0
libtpu: 0.0.40
codegen_flags: <defaults>
</compile_context>

<pallas_src>
import jax
import jax.numpy as jnp
from jax.experimental import pallas as pl
from jax.experimental.pallas import tpu as pltpu


def _round_up(n, m):
    return (n + m - 1) // m * m


def _choose_tile_m(batch, d, io_bytes, target_tile_bytes=2 << 20):
    """Batch tile: ~2 MiB per x tile, v7x-VMEM-safe, 2-TC friendly."""
    align = 16 if io_bytes == 2 else 8          # bf16 packs 16 sublanes / vreg
    row_bytes = max(d * io_bytes, 1)

    tm = target_tile_bytes // row_bytes          # ~2 MiB per x tile
    tm = max(align, tm // align * align)

    # Keep the double-buffered x+out working set (4 * TM * D * bytes) <~ 24 MiB
    # so the kernel also fits v7x's 64 MiB physical VMEM with headroom.
    cap = (24 << 20) // (4 * row_bytes)
    cap = max(align, cap // align * align)
    tm = min(tm, cap)

    # v7x megacore: give the "parallel" batch axis at least 2 grid steps.
    if batch > 2 * align:
        tm = min(tm, _round_up(pl.cdiv(batch, 2), align))

    if tm >= batch:
        return batch    # single full block (block dim == full array dim is legal)
    return tm


def autoencoder_kernel(x_ref, w1_ref, b1_ref, w23_ref, b23_ref, w4_ref, b4_ref,
                       o_ref):
    x = x_ref[...]

    # Encoder layer 1: Linear(D, 16) + ReLU.  MXU accumulates in f32; the bias
    # add / ReLU are done in f32 (v5e's VPU has no bf16 ALU).
    h1 = jnp.dot(x.astype(w1_ref.dtype), w1_ref[...],
                 preferred_element_type=jnp.float32) + b1_ref[...]
    h1 = jnp.maximum(h1, 0.0)

    # Folded encoder Linear(16, 8) + decoder Linear(8, 16): no nonlinearity in
    # between, so (h1 @ w2 + b2) @ w3 + b3 == h1 @ (w2 @ w3) + (b2 @ w3 + b3).
    h2 = jnp.dot(h1.astype(w23_ref.dtype), w23_ref[...],
                 preferred_element_type=jnp.float32) + b23_ref[...]
    h2 = jnp.maximum(h2, 0.0)

    # Decoder layer 2: Linear(16, D).
    out = jnp.dot(h2.astype(w4_ref.dtype), w4_ref[...],
                  preferred_element_type=jnp.float32) + b4_ref[...]
    o_ref[...] = out.astype(o_ref.dtype)


def _build_call(batch, d, tm, out_dtype, *, single_buffer_weights, vmem_limit,
                cost):
    def streamed(shape):
        return pl.BlockSpec(shape, lambda i: (i, 0))

    if single_buffer_weights:
        # Grid-invariant operands: one VMEM buffer instead of two.
        def resident(shape):
            return pl.BlockSpec(shape, lambda i: (0, 0),
                                pipeline_mode=pl.Buffered(1))
    else:
        def resident(shape):
            return pl.BlockSpec(shape, lambda i: (0, 0))

    return pl.pallas_call(
        autoencoder_kernel,
        out_shape=jax.ShapeDtypeStruct((batch, d), out_dtype),
        grid=(pl.cdiv(batch, tm),),
        in_specs=[
            streamed((tm, d)),     # x tile (double-buffered; partial last block)
            resident((d, 16)),     # w1   (VMEM-resident across the grid)
            resident((1, 16)),     # b1
            resident((16, 16)),    # w23
            resident((1, 16)),     # b23
            resident((16, d)),     # w4
            resident((1, d)),      # b4
        ],
        out_specs=streamed((tm, d)),
        compiler_params=pltpu.CompilerParams(
            dimension_semantics=("parallel",),
            vmem_limit_bytes=vmem_limit),
        cost_estimate=cost,
    )


def autoencoder_forward(x, prepared):
    """x: [B, D] (f32 or bf16). prepared: output of prepare_params().

    No wrapper-side pad / crop / cast copies: x and the output are streamed at
    their natural shapes (partial last batch block, full-D lane block)."""
    B, D = x.shape
    io_bytes = x.dtype.itemsize
    w_bytes = prepared["w1"].dtype.itemsize
    TM = _choose_tile_m(B, D, io_bytes)

    working_set = (4 * TM * D * io_bytes                         # x + out, 2 bufs each
                   + 4 * (D * 16 + 16 * 16 + 16 * D) * w_bytes   # weights (<=2 bufs)
                   + 4 * (16 + 16 + D) * 4)                      # f32 biases
    vmem_limit = int(min(48 << 20, max(2 * working_set + (2 << 20), 32 << 20)))

    cost = pl.CostEstimate(
        flops=int(2 * B * (16 * D + 16 * 16 + 16 * D)),
        transcendentals=0,
        bytes_accessed=int(2 * B * D * io_bytes
                           + (D * 16 + 16 * 16 + 16 * D) * w_bytes
                           + (16 + 16 + D) * 4),
    )

    args = (x, prepared["w1"], prepared["b1"], prepared["w23"],
            prepared["b23"], prepared["w4"], prepared["b4"])
    try:
        return _build_call(B, D, TM, x.dtype, single_buffer_weights=True,
                           vmem_limit=vmem_limit, cost=cost)(*args)
    except Exception:
        # pipeline_mode support varies across JAX versions; fall back to the
        # default (double-buffered) specs for the tiny resident operands.
        return _build_call(B, D, TM, x.dtype, single_buffer_weights=False,
                           vmem_limit=vmem_limit, cost=cost)(*args)


def prepare_params(params, io_dtype=jnp.float32):
    """One-time preprocessing (hoisted out of the per-call forward path):
    fold the two consecutive linears and cast matmul weights to io_dtype
    (bf16 halves the resident weight bytes; biases stay f32)."""
    w23 = params["w2"] @ params["w3"]                    # [16, 16]
    b23 = params["b2"] @ params["w3"] + params["b3"]     # [1, 16]
    return dict(
        w1=params["w1"].astype(io_dtype),
        w23=w23.astype(io_dtype),
        w4=params["w4"].astype(io_dtype),
        b1=params["b1"].astype(jnp.float32),
        b23=b23.astype(jnp.float32),
        b4=params["b4"].astype(jnp.float32),
    )


def init_params(key, input_dim):
    """Deterministic init matching PyTorch Linear shapes (stored transposed:
    weights [in_features, out_features], biases [1, out_features])."""
    def linear(k, fan_in, fan_out):
        kw, kb = jax.random.split(k)
        bound = 1.0 / jnp.sqrt(fan_in)
        w = jax.random.uniform(kw, (fan_in, fan_out), jnp.float32, -bound, bound)
        b = jax.random.uniform(kb, (1, fan_out), jnp.float32, -bound, bound)
        return w, b

    k1, k2, k3, k4 = jax.random.split(key, 4)
    w1, b1 = linear(k1, input_dim, 16)
    w2, b2 = linear(k2, 16, 8)
    w3, b3 = linear(k3, 8, 16)
    w4, b4 = linear(k4, 16, input_dim)
    return dict(w1=w1, b1=b1, w2=w2, b2=b2, w3=w3, b3=b3, w4=w4, b4=b4)


def reference_forward(x, p):
    h = jnp.maximum(x @ p["w1"] + p["b1"], 0.0)
    z = h @ p["w2"] + p["b2"]
    d = jnp.maximum(z @ p["w3"] + p["b3"], 0.0)
    return d @ p["w4"] + p["b4"]


if __name__ == "__main__":
    key = jax.random.PRNGKey(0)
    kx, kp = jax.random.split(key)

    # B not a TM multiple and D not a multiple of 128: exercises the
    # partial-last-block and full-dim-lane-block paths (no pad/crop copies).
    batch, input_dim = 24, 48
    x = jax.random.normal(kx, (batch, input_dim), jnp.float32)
    params = init_params(kp, input_dim)
    ref = reference_forward(x, params)

    # f32 streaming path (matches the PyTorch module's f32 forward).
    p_f32 = prepare_params(params, jnp.float32)
    out_f32 = jax.block_until_ready(autoencoder_forward(x, p_f32))
    assert out_f32.shape == (batch, input_dim)
    assert out_f32.dtype == jnp.float32
    # Tolerance covers the exact-but-reassociated w2@w3 fold plus any
    # difference between XLA's and Mosaic's default f32 matmul precision.
    assert jnp.allclose(out_f32, ref, atol=3e-2, rtol=3e-2)

    # bf16 streaming path (halves HBM traffic on the dominant x/out tensors).
    p_bf16 = prepare_params(params, jnp.bfloat16)
    out_bf16 = jax.block_until_ready(
        autoencoder_forward(x.astype(jnp.bfloat16), p_bf16))
    assert out_bf16.shape == (batch, input_dim)
    assert out_bf16.dtype == jnp.bfloat16
    assert jnp.allclose(out_bf16.astype(jnp.float32), ref, atol=0.15, rtol=0.1)

    print("KERNEL_OK")
</pallas_src>

<mosaic_0001>
module attributes {stable_mosaic.version = 11 : i64} {
  func.func @autoencoder_kernel(%arg0: i32, %arg1: memref<16x48xf32, #tpu.memory_space<vmem>>, %arg2: memref<48x16xf32, #tpu.memory_space<vmem>>, %arg3: memref<1x16xf32, #tpu.memory_space<vmem>>, %arg4: memref<16x16xf32, #tpu.memory_space<vmem>>, %arg5: memref<1x16xf32, #tpu.memory_space<vmem>>, %arg6: memref<16x48xf32, #tpu.memory_space<vmem>>, %arg7: memref<1x48xf32, #tpu.memory_space<vmem>>, %arg8: memref<16x48xf32, #tpu.memory_space<vmem>>) attributes {dimension_semantics = [#tpu.dimension_semantics<parallel>], iteration_bounds = array<i64: 2>, scalar_prefetch = 0 : i64, scratch_operands = 0 : i64, tpu.core_type = #tpu.core_type<tc>, window_params = [{transform_indices = @transform_0, window_bounds = array<i64: 16, 48>}, {pipeline_mode = #tpu.pipeline_mode<synchronous>, transform_indices = @transform_1, window_bounds = array<i64: 48, 16>}, {pipeline_mode = #tpu.pipeline_mode<synchronous>, transform_indices = @transform_2, window_bounds = array<i64: 1, 16>}, {pipeline_mode = #tpu.pipeline_mode<synchronous>, transform_indices = @transform_3, window_bounds = array<i64: 16, 16>}, {pipeline_mode = #tpu.pipeline_mode<synchronous>, transform_indices = @transform_4, window_bounds = array<i64: 1, 16>}, {pipeline_mode = #tpu.pipeline_mode<synchronous>, transform_indices = @transform_5, window_bounds = array<i64: 16, 48>}, {pipeline_mode = #tpu.pipeline_mode<synchronous>, transform_indices = @transform_6, window_bounds = array<i64: 1, 48>}, {transform_indices = @transform_7, window_bounds = array<i64: 16, 48>}]} {
    %c0 = arith.constant 0 : index
    %c0_0 = arith.constant 0 : index
    %0 = vector.load %arg1[%c0, %c0_0] : memref<16x48xf32, #tpu.memory_space<vmem>>, vector<16x48xf32>
    %c0_1 = arith.constant 0 : index
    %c0_2 = arith.constant 0 : index
    %1 = vector.load %arg2[%c0_1, %c0_2] : memref<48x16xf32, #tpu.memory_space<vmem>>, vector<48x16xf32>
    %cst = arith.constant dense<0.000000e+00> : vector<16x16xf32>
    %2 = tpu.matmul %0, %1, %cst {dimension_numbers = #tpu.dot_dimension_numbers<[1], [0], [0], [1], [0, 0, 1, 1], [], []>} : vector<16x48xf32>, vector<48x16xf32>, vector<16x16xf32> -> vector<16x16xf32>
    %c0_3 = arith.constant 0 : index
    %c0_4 = arith.constant 0 : index
    %3 = vector.load %arg3[%c0_3, %c0_4] : memref<1x16xf32, #tpu.memory_space<vmem>>, vector<1x16xf32>
    %4 = vector.broadcast %3 : vector<1x16xf32> to vector<16x16xf32>
    %5 = arith.addf %2, %4 : vector<16x16xf32>
    %cst_5 = arith.constant 0.000000e+00 : f32
    %6 = vector.broadcast %cst_5 : f32 to vector<16x16xf32>
    %7 = arith.maximumf %5, %6 : vector<16x16xf32>
    %c0_6 = arith.constant 0 : index
    %c0_7 = arith.constant 0 : index
    %8 = vector.load %arg4[%c0_6, %c0_7] : memref<16x16xf32, #tpu.memory_space<vmem>>, vector<16x16xf32>
    %cst_8 = arith.constant dense<0.000000e+00> : vector<16x16xf32>
    %9 = tpu.matmul %7, %8, %cst_8 {dimension_numbers = #tpu.dot_dimension_numbers<[1], [0], [0], [1], [0, 0, 1, 1], [], []>} : vector<16x16xf32>, vector<16x16xf32>, vector<16x16xf32> -> vector<16x16xf32>
    %c0_9 = arith.constant 0 : index
    %c0_10 = arith.constant 0 : index
    %10 = vector.load %arg5[%c0_9, %c0_10] : memref<1x16xf32, #tpu.memory_space<vmem>>, vector<1x16xf32>
    %11 = vector.broadcast %10 : vector<1x16xf32> to vector<16x16xf32>
    %12 = arith.addf %9, %11 : vector<16x16xf32>
    %cst_11 = arith.constant 0.000000e+00 : f32
    %13 = vector.broadcast %cst_11 : f32 to vector<16x16xf32>
    %14 = arith.maximumf %12, %13 : vector<16x16xf32>
    %c0_12 = arith.constant 0 : index
    %c0_13 = arith.constant 0 : index
    %15 = vector.load %arg6[%c0_12, %c0_13] : memref<16x48xf32, #tpu.memory_space<vmem>>, vector<16x48xf32>
    %cst_14 = arith.constant dense<0.000000e+00> : vector<16x48xf32>
    %16 = tpu.matmul %14, %15, %cst_14 {dimension_numbers = #tpu.dot_dimension_numbers<[1], [0], [0], [1], [0, 0, 1, 1], [], []>} : vector<16x16xf32>, vector<16x48xf32>, vector<16x48xf32> -> vector<16x48xf32>
    %c0_15 = arith.constant 0 : index
    %c0_16 = arith.constant 0 : index
    %17 = vector.load %arg7[%c0_15, %c0_16] : memref<1x48xf32, #tpu.memory_space<vmem>>, vector<1x48xf32>
    %18 = vector.broadcast %17 : vector<1x48xf32> to vector<16x48xf32>
    %19 = arith.addf %16, %18 : vector<16x48xf32>
    %c0_17 = arith.constant 0 : index
    %c0_18 = arith.constant 0 : index
    %20 = vector.load %arg8[%c0_17, %c0_18] : memref<16x48xf32, #tpu.memory_space<vmem>>, vector<16x48xf32>
    tpu.vector_store %arg8[%c0_17, %c0_18], %19 {strides = array<i32>} : memref<16x48xf32, #tpu.memory_space<vmem>>, vector<16x48xf32>,
    return
  }
  func.func @transform_0(%arg0: i32) -> (i32, i32) {
    %c0_i32 = arith.constant 0 : i32
    %c0_i32_0 = arith.constant 0 : i32
    return %arg0, %c0_i32 : i32, i32
  }
  func.func @transform_1(%arg0: i32) -> (i32, i32) {
    %c0_i32 = arith.constant 0 : i32
    %c0_i32_0 = arith.constant 0 : i32
    %c0_i32_1 = arith.constant 0 : i32
    return %c0_i32, %c0_i32_0 : i32, i32
  }
  func.func @transform_2(%arg0: i32) -> (i32, i32) {
    %c0_i32 = arith.constant 0 : i32
    %c0_i32_0 = arith.constant 0 : i32
    %c0_i32_1 = arith.constant 0 : i32
    return %c0_i32, %c0_i32_0 : i32, i32
  }
  func.func @transform_3(%arg0: i32) -> (i32, i32) {
    %c0_i32 = arith.constant 0 : i32
    %c0_i32_0 = arith.constant 0 : i32
    %c0_i32_1 = arith.constant 0 : i32
    return %c0_i32, %c0_i32_0 : i32, i32
  }
  func.func @transform_4(%arg0: i32) -> (i32, i32) {
    %c0_i32 = arith.constant 0 : i32
    %c0_i32_0 = arith.constant 0 : i32
    %c0_i32_1 = arith.constant 0 : i32
    return %c0_i32, %c0_i32_0 : i32, i32
  }
  func.func @transform_5(%arg0: i32) -> (i32, i32) {
    %c0_i32 = arith.constant 0 : i32
    %c0_i32_0 = arith.constant 0 : i32
    %c0_i32_1 = arith.constant 0 : i32
    return %c0_i32, %c0_i32_0 : i32, i32
  }
  func.func @transform_6(%arg0: i32) -> (i32, i32) {
    %c0_i32 = arith.constant 0 : i32
    %c0_i32_0 = arith.constant 0 : i32
    %c0_i32_1 = arith.constant 0 : i32
    return %c0_i32, %c0_i32_0 : i32, i32
  }
  func.func @transform_7(%arg0: i32) -> (i32, i32) {
    %c0_i32 = arith.constant 0 : i32
    %c0_i32_0 = arith.constant 0 : i32
    return %arg0, %c0_i32 : i32, i32
  }
}

module attributes {stable_mosaic.version = 11 : i64} {
  func.func @autoencoder_kernel(%arg0: i32, %arg1: memref<16x48xf32, #tpu.memory_space<vmem>>, %arg2: memref<48x16xf32, #tpu.memory_space<vmem>>, %arg3: memref<1x16xf32, #tpu.memory_space<vmem>>, %arg4: memref<16x16xf32, #tpu.memory_space<vmem>>, %arg5: memref<1x16xf32, #tpu.memory_space<vmem>>, %arg6: memref<16x48xf32, #tpu.memory_space<vmem>>, %arg7: memref<1x48xf32, #tpu.memory_space<vmem>>, %arg8: memref<16x48xf32, #tpu.memory_space<vmem>>) attributes {dimension_semantics = [#tpu.dimension_semantics<parallel>], iteration_bounds = array<i64: 2>, scalar_prefetch = 0 : i64, scratch_operands = 0 : i64, tpu.core_type = #tpu.core_type<tc>, window_params = [{transform_indices = @transform_0, window_bounds = array<i64: 16, 48>}, {pipeline_mode = #tpu.pipeline_mode<synchronous>, transform_indices = @transform_1, window_bounds = array<i64: 48, 16>}, {pipeline_mode = #tpu.pipeline_mode<synchronous>, transform_indices = @transform_2, window_bounds = array<i64: 1, 16>}, {pipeline_mode = #tpu.pipeline_mode<synchronous>, transform_indices = @transform_3, window_bounds = array<i64: 16, 16>}, {pipeline_mode = #tpu.pipeline_mode<synchronous>, transform_indices = @transform_4, window_bounds = array<i64: 1, 16>}, {pipeline_mode = #tpu.pipeline_mode<synchronous>, transform_indices = @transform_5, window_bounds = array<i64: 16, 48>}, {pipeline_mode = #tpu.pipeline_mode<synchronous>, transform_indices = @transform_6, window_bounds = array<i64: 1, 48>}, {transform_indices = @transform_7, window_bounds = array<i64: 16, 48>}]} {
    %c0 = arith.constant 0 : index
    %c0_0 = arith.constant 0 : index
    %0 = vector.load %arg1[%c0, %c0_0] : memref<16x48xf32, #tpu.memory_space<vmem>>, vector<16x48xf32>
    %c0_1 = arith.constant 0 : index
    %c0_2 = arith.constant 0 : index
    %1 = vector.load %arg2[%c0_1, %c0_2] : memref<48x16xf32, #tpu.memory_space<vmem>>, vector<48x16xf32>
    %cst = arith.constant dense<0.000000e+00> : vector<16x16xf32>
    %2 = tpu.matmul %0, %1, %cst {dimension_numbers = #tpu.dot_dimension_numbers<[1], [0], [0], [1], [0, 0, 1, 1], [], []>} : vector<16x48xf32>, vector<48x16xf32>, vector<16x16xf32> -> vector<16x16xf32>
    %c0_3 = arith.constant 0 : index
    %c0_4 = arith.constant 0 : index
    %3 = vector.load %arg3[%c0_3, %c0_4] : memref<1x16xf32, #tpu.memory_space<vmem>>, vector<1x16xf32>
    %4 = vector.broadcast %3 : vector<1x16xf32> to vector<16x16xf32>
    %5 = arith.addf %2, %4 : vector<16x16xf32>
    %cst_5 = arith.constant 0.000000e+00 : f32
    %6 = vector.broadcast %cst_5 : f32 to vector<16x16xf32>
    %7 = arith.maximumf %5, %6 : vector<16x16xf32>
    %c0_6 = arith.constant 0 : index
    %c0_7 = arith.constant 0 : index
    %8 = vector.load %arg4[%c0_6, %c0_7] : memref<16x16xf32, #tpu.memory_space<vmem>>, vector<16x16xf32>
    %cst_8 = arith.constant dense<0.000000e+00> : vector<16x16xf32>
    %9 = tpu.matmul %7, %8, %cst_8 {dimension_numbers = #tpu.dot_dimension_numbers<[1], [0], [0], [1], [0, 0, 1, 1], [], []>} : vector<16x16xf32>, vector<16x16xf32>, vector<16x16xf32> -> vector<16x16xf32>
    %c0_9 = arith.constant 0 : index
    %c0_10 = arith.constant 0 : index
    %10 = vector.load %arg5[%c0_9, %c0_10] : memref<1x16xf32, #tpu.memory_space<vmem>>, vector<1x16xf32>
    %11 = vector.broadcast %10 : vector<1x16xf32> to vector<16x16xf32>
    %12 = arith.addf %9, %11 : vector<16x16xf32>
    %cst_11 = arith.constant 0.000000e+00 : f32
    %13 = vector.broadcast %cst_11 : f32 to vector<16x16xf32>
    %14 = arith.maximumf %12, %13 : vector<16x16xf32>
    %c0_12 = arith.constant 0 : index
    %c0_13 = arith.constant 0 : index
    %15 = vector.load %arg6[%c0_12, %c0_13] : memref<16x48xf32, #tpu.memory_space<vmem>>, vector<16x48xf32>
    %cst_14 = arith.constant dense<0.000000e+00> : vector<16x48xf32>
    %16 = tpu.matmul %14, %15, %cst_14 {dimension_numbers = #tpu.dot_dimension_numbers<[1], [0], [0], [1], [0, 0, 1, 1], [], []>} : vector<16x16xf32>, vector<16x48xf32>, vector<16x48xf32> -> vector<16x48xf32>
    %c0_15 = arith.constant 0 : index
    %c0_16 = arith.constant 0 : index
    %17 = vector.load %arg7[%c0_15, %c0_16] : memref<1x48xf32, #tpu.memory_space<vmem>>, vector<1x48xf32>
    %18 = vector.broadcast %17 : vector<1x48xf32> to vector<16x48xf32>
    %19 = arith.addf %16, %18 : vector<16x48xf32>
    %c0_17 = arith.constant 0 : index
    %c0_18 = arith.constant 0 : index
    %20 = vector.load %arg8[%c0_17, %c0_18] : memref<16x48xf32, #tpu.memory_space<vmem>>, vector<16x48xf32>
    tpu.vector_store %arg8[%c0_17, %c0_18], %19 {strides = array<i32>} : memref<16x48xf32, #tpu.memory_space<vmem>>, vector<16x48xf32>,
    return
  }
  func.func @transform_0(%arg0: i32) -> (i32, i32) {
    %c0_i32 = arith.constant 0 : i32
    %c0_i32_0 = arith.constant 0 : i32
    return %arg0, %c0_i32 : i32, i32
  }
  func.func @transform_1(%arg0: i32) -> (i32, i32) {
    %c0_i32 = arith.constant 0 : i32
    %c0_i32_0 = arith.constant 0 : i32
    %c0_i32_1 = arith.constant 0 : i32
    return %c0_i32, %c0_i32_0 : i32, i32
  }
  func.func @transform_2(%arg0: i32) -> (i32, i32) {
    %c0_i32 = arith.constant 0 : i32
    %c0_i32_0 = arith.constant 0 : i32
    %c0_i32_1 = arith.constant 0 : i32
    return %c0_i32, %c0_i32_0 : i32, i32
  }
  func.func @transform_3(%arg0: i32) -> (i32, i32) {
    %c0_i32 = arith.constant 0 : i32
    %c0_i32_0 = arith.constant 0 : i32
    %c0_i32_1 = arith.constant 0 : i32
    return %c0_i32, %c0_i32_0 : i32, i32
  }
  func.func @transform_4(%arg0: i32) -> (i32, i32) {
    %c0_i32 = arith.constant 0 : i32
    %c0_i32_0 = arith.constant 0 : i32
    %c0_i32_1 = arith.constant 0 : i32
    return %c0_i32, %c0_i32_0 : i32, i32
  }
  func.func @transform_5(%arg0: i32) -> (i32, i32) {
    %c0_i32 = arith.constant 0 : i32
    %c0_i32_0 = arith.constant 0 : i32
    %c0_i32_1 = arith.constant 0 : i32
    return %c0_i32, %c0_i32_0 : i32, i32
  }
  func.func @transform_6(%arg0: i32) -> (i32, i32) {
    %c0_i32 = arith.constant 0 : i32
    %c0_i32_0 = arith.constant 0 : i32
    %c0_i32_1 = arith.constant 0 : i32
    return %c0_i32, %c0_i32_0 : i32, i32
  }
  func.func @transform_7(%arg0: i32) -> (i32, i32) {
    %c0_i32 = arith.constant 0 : i32
    %c0_i32_0 = arith.constant 0 : i32
    return %arg0, %c0_i32 : i32, i32
  }
}

</mosaic_0001>

<bundles_post_ra>
// kernel: tpu_custom_call.1
= control target key start
LH: loop header
LB: loop body
LE: loop exit
PB: predicated region body
PF: predicated region fallthrough
CT: control target
= control target key end

     0   :  { %12 = vsyncpa [#allocation3], 0  ;;  %s1049_s0 = inlined_call_operand.vmem [shape: f32[24,48], index: 0, kind: input, shape index: {}]   ;;  %s1050_s1 = inlined_call_operand.vmem [shape: f32[48,16], index: 1, kind: input, shape index: {}]   ;;  %s1051_s2 = inlined_call_operand.vmem [shape: f32[1,16], index: 2, kind: input, shape index: {}]   ;;  %s1052_s3 = inlined_call_operand.vmem [shape: f32[16,16], index: 3, kind: input, shape index: {}]   ;;  %s1053_s4 = inlined_call_operand.vmem [shape: f32[1,16], index: 4, kind: input, shape index: {}]   ;;  %s1054_s5 = inlined_call_operand.vmem [shape: f32[16,48], index: 5, kind: input, shape index: {}]   ;;  %s1055_s6 = inlined_call_operand.vmem [shape: f32[1,48], index: 6, kind: input, shape index: {}]   ;;  %s1056_s7 = inlined_call_operand.hbm [shape: f32[24,48], index: 7, kind: output, shape index: {}]  }
   0x1   :  { %14 = vsyncpa [#allocation3 + $0x1], 0  ;;  %s886_s24 = smov 0   ;;  %s888_s25 = smov 0  }
   0x2   :  { %s890_s26 = smov 0   ;;  %s892_s27 = smov 0  }
   0x3 LB: > { %s907_s28 = sadd.s32 4294967295, %s841_s27   ;;  %s670_s29 = sadd.s32 4294967294, %s841_s27   ;;  %s841_s27 = sphi %s892_s27, %s1062_s27   ;;  %s837_s26 = sphi %s890_s26, %s1061_s26   ;;  %s833_s25 = sphi %s888_s25, %s1060_s25   ;;  %s829_s24 = sphi %s886_s24, %s1059_s24  }
   0x4   : > { %s911_s30 = sadd.s32 1, %s841_s27   ;;  %s179_s8 = sadd.s32 1, %s837_s26 }
   0x5   : > { %s176_s9 = ssub.s32 %s841_s27, %s911_s30  ;;  %p189_p0 = scmp.ne.s32.totalorder %s837_s26, %s833_s25 }
   0x6   : > { %p177_p1 = scmp.eq.s32.totalorder %s176_s9, 0  ;;  %p190_p2 = scmp.eq.s32.totalorder %s907_s28, 1 }
   0x7   : > { %p195_p3 = scmp.ne.s32.totalorder %s833_s25, %s829_s24  ;;  %p196_p4 = scmp.eq.s32.totalorder %s670_s29, 1 }
   0x8   : > { %s922_s10 = scalar_select %p177_p1, %s837_s26, %s179_s8  }
   0x9   : > { %p924_p5 = por %p190_p2, %p189_p0  ;;  %p928_p6 = por %p196_p4, %p195_p3 }
   0xa   : > { %p673_p7 = scmp.ge.s32.totalorder %s841_s27, 1  ;;  %p249_p8 = scmp.lt.s32.totalorder %s841_s27, 3 }
   0xc   : > { %p250_p9 = pnand %p673_p7, %p249_p8 }
   0xd   : > { %s941_s17 = sshll.u32 (!%p250_p9), %s907_s28, 1  ;;  %s282_s16 = sand.u32 (!%p250_p9), 1, %s833_s25  }
   0xe   : > { %253 = sbr.rel (%p250_p9) target bundleno = 657 (0x291), region = 48  ;;  %p290_p10 = scmp.lt.s32.totalorder (!%p250_p9), %s941_s17, 2 }
   0xf   : > { %s674_s18 = sshll.u32 (!%p250_p9), %s282_s16, 4  ;;  %s990_s22 = scalar_lea.sflag (!%p250_p9), [#allocation3], %s282_s16 }
  0x10   : > { %s284_s21 = scalar_lea.vmem (!%p250_p9), [#allocation2], %s674_s18 }
  0x13   : > { %v311_v0 = vld [vmem:[%s1050_s1 + $0x28] sm:$0xff]  ;;  %v310_v1 = vld [vmem:[%s1050_s1 + $0x20] sm:$0xff]  ;;  %v309_v2 = vld [vmem:[%s1050_s1 + $0x18] sm:$0xff]  ;;  %s291_s20 = scalar_select %p290_p10, %s941_s17, 2  ;;  %vm319_vm0 = vcmask 392192   ;;  %vm412_vm1 = vcmask 130048  }
  0x14   : > { %712 = vmatprep.subr.mxu0 %v311_v0  ;;  %v308_v3 = vld [vmem:[%s1050_s1 + $0x10] sm:$0xff]  ;;  %v307_v4 = vld [vmem:[%s1050_s1 + $0x8] sm:$0xff]  ;;  %v306_v6 = vld [vmem:[%s1050_s1] sm:$0xff] }
  0x15   : > { %713 = vmatpush3.msra.mxu0 %v311_v0  ;;  %s676_s23 = sshll.u32 %s291_s20, 3  ;;  %v404_v8 = vld [vmem:[%s1052_s3 + $0x8] sm:$0xff]  ;;  %v403_v9 = vld [vmem:[%s1052_s3] sm:$0xff] }
  0x16   : > { %714 = vmatprep.subr.mxu0 %v310_v1  ;;  %s293_s14 = scalar_lea.vmem %s1049_s0, %s676_s23  ;;  %727 = vmatprep.subr.mxu1 %v404_v8  ;;  %v677_v10 = vld [vmem:[%s1051_s2] ss:$0 sm:$0xff]  ;;  %v497_v17 = vld [vmem:[%s1054_s5 + $0x8] sm:$0xff]  ;;  %s597_s23 = ssub.s32 (%p924_p5), 3, %s941_s17 }
  0x17   : > { %715 = vmatpush3.msra.mxu0 %v310_v1  ;;  %v304_v5 = vld [vmem:[%s293_s14] sm:$0xff]  ;;  %v305_v7 = vld [vmem:[%s293_s14 + $0x8] sm:$0xff]  ;;  %728 = vmatpush3.msra.mxu1 %v404_v8  ;;  %p598_p11 = scmp.lt.s32.totalorder (%p924_p5), %s597_s23, 2 }
  0x18   : > { %716 = vmatprep.subr.mxu0 %v309_v2  ;;  %724 = vmatprep.mubr.msk.f32.mxu0 %vm319_vm0, %v304_v5  ;;  %v496_v18 = vld [vmem:[%s1054_s5] sm:$0xff] }
  0x19   : > { %717 = vmatpush3.msra.mxu0 %v309_v2  ;;  %729 = vmatprep.subr.mxu1 %v403_v9  ;;  %v680_v19 = vld [vmem:[%s1053_s4] ss:$0 sm:$0xff] }
  0x1a   : > { %718 = vmatprep.subr.mxu0 %v308_v3  ;;  %730 = vmatpush3.msra.mxu1 %v403_v9  ;;  %v683_v26 = vld [vmem:[%s1055_s6] ss:$0 sm:$0xff] }
  0x1b   : > { %719 = vmatpush3.msra.mxu0 %v308_v3  ;;  %734 = vmatprep.subr.mxu1 %v497_v17 }
  0x1c   : > { %720 = vmatprep.subr.mxu0 %v307_v4 }
  0x1d   : > { %721 = vmatpush3.msra.mxu0 %v307_v4 }
  0x1e   : > { %722 = vmatprep.subr.mxu0 %v306_v6 }
  0x1f   : > { %723 = vmatpush3.msra.mxu0 %v306_v6 }
  0x20   : > { %725 = vmatmul.mubr.msk.f32.vlgmr.msra.gmra.mxu0 %vm319_vm0, %v305_v7 }
  0xe0   : > { %v726_v11 = vpop.f32.mrf.mxu0 }
  0xe1   : > { %v398_v12 = vadd.f32 %v726_v11, %v677_v10 }
  0xe2   : > { %v392_v13 = vpop.f32.mrf.mxu0 }
  0xe3   : > { %v393_v14 = vadd.f32 %v677_v10, %v392_v13  ;;  %v402_v16 = vmax.f32 %v398_v12, 0.0 }
  0xe5   : > { %v401_v15 = vmax.f32 %v393_v14, 0.0 }
  0xe7   : > { %731 = vmatprep.mubr.msk.f32.mxu1 %vm412_vm1, %v401_v15 }
  0xe8   : > { %732 = vmatmul.mubr.msk.f32.vlgmr.msra.gmra.mxu1 %vm412_vm1, %v402_v16 }
  0xe9   : > { %735 = vmatpush3.msra.mxu1 %v497_v17 }
  0xea   : > { %736 = vmatprep.subr.mxu1 %v496_v18 }
  0xeb   : > { %737 = vmatpush3.msra.mxu1 %v496_v18 }
 0x1a8   : > { %v733_v20 = vpop.f32.mrf.mxu1 }
 0x1a9   : > { %v491_v21 = vadd.f32 %v733_v20, %v680_v19 }
 0x1aa   : > { %v485_v22 = vpop.f32.mrf.mxu1 }
 0x1ab   : > { %v486_v23 = vadd.f32 %v680_v19, %v485_v22  ;;  %v495_v25 = vmax.f32 %v491_v21, 0.0 }
 0x1ad   : > { %v494_v24 = vmax.f32 %v486_v23, 0.0 }
 0x1af   : > { %738 = vmatprep.mubr.msk.f32.mxu1 %vm412_vm1, %v494_v24 }
 0x1b0   : > { %739 = vmatmul.mubr.msk.f32.vlgmr.msra.gmra.mxu1 %vm412_vm1, %v495_v25 }
 0x270   : > { %v740_v27 = vpop.f32.mrf.mxu1 }
 0x271   : > { %v583_v28 = vadd.f32 %v740_v27, %v683_v26  ;;  %595 = sbr.rel (!%p924_p5) target bundleno = 657 (0x291), region = 52 }
 0x272   : > { %v577_v29 = vpop.f32.mrf.mxu1 }
 0x273   : > { %587 = vst.msk [vmem:[%s284_s21 + $0x8] sm:$0xff] %vm319_vm0, %v583_v28  ;;  %v578_v30 = vadd.f32 %v683_v26, %v577_v29 }
 0x275   : > { %586 = vst.msk [vmem:[%s284_s21] sm:$0xff] %vm319_vm0, %v578_v30 }
 0x276   : > { %s1064_s23 = smov (!%p598_p11, %s597_s23), 2 }
 0x277   : > { %s995_s29 = sshll.u32 %s1064_s23, 7 }
 0x278   : > { %s602_s8 = ssub.s32 256, %s995_s29 }
 0x279   : > { %603 = vsyncadd %s990_s22, %s602_s8  ;;  %p689_p12 = scmp.ne.s32.totalorder %s995_s29, 0  ;;  %s695_s9 = sshll.u32 %s907_s28, 8 }
 0x27a   : > { %s1004_s11 = scalar_lea.hbm %s1056_s7, %s695_s9  ;;  %s608_s15 = sshll.u32 %s284_s21, 4  ;;  %s1006_s15 = int_to_ptr.vmem [resolvable:$true] %s608_s15 }
 0x27b   : > { %s781_s17 = scalar_lea.vmem %s1006_s15, %s995_s29  ;;  %s843_s16 = smov [#allocation2]  }
 0x27c   : > { %p782_p13 = scmp.ne.s32.totalorder %s1006_s15, %s781_s17  ;;  %s785_s18 = sshll.u32 %s843_s16, 4  ;;  %s786_s18 = int_to_ptr.vmem [resolvable:$false] %s785_s18 }
 0x27d   : > { %s787_s28 = scalar_lea.vmem %s786_s18, 512  ;;  %p788_p2 = scmp.lt.s32.totalorder %s1006_s15, %s786_s18 }
 0x27e   : > { %p783_p0 = pnand %p782_p13, %p689_p12  ;;  %p789_p3 = scmp.lt.s32.totalorder %s787_s28, %s781_s17 }
 0x280   : > { %p784_p1 = pneg %p783_p0  ;;  %p790_p4 = por %p789_p3, %p788_p2 }
 0x282   : > { %p791_p5 = pnand %p790_p4, %p784_p1 }
 0x284   : > { %794 = shalt.err (!%p791_p5)
}
 0x285   : > { %s795_s19 = scalar_lea.hbm %s1004_s11, %s995_s29  ;;  %s799_s23 = scalar_lea.hbm %s1056_s7, 384 }
 0x286   : > { %p796_p7 = scmp.ne.s32.totalorder %s1004_s11, %s795_s19  ;;  %p800_p10 = scmp.lt.s32.totalorder %s1004_s11, %s1056_s7 }
 0x287   : > { %p801_p11 = scmp.lt.s32.totalorder %s799_s23, %s795_s19 }
 0x288   : > { %p797_p8 = pnand %p796_p7, %p689_p12 }
 0x289   : > { %p802_p13 = por %p801_p11, %p800_p10 }
 0x28a   : > { %p798_p9 = pneg %p797_p8 }
 0x28c   : > { %p803_p0 = pnand %p802_p13, %p798_p9 }
 0x28e   : > { %806 = shalt.err (!%p803_p0)
}
 0x28f   : > { %s844_s13 = smov 128   ;;  %s845_s14 = smov 8  }
 0x290   : > { %614 = dma.vmem_to_hbm [thread:$0]  (%p689_p12), %s1006_s15, %s995_s29, %s1004_s11, %s990_s22, %s844_s13, %s844_s13, %s845_s14  }
 0x291 PF: > { %p746_p1 = scmp.ge.s32.totalorder %s841_s27, 2  ;;  %s623_s17 = sand.u32 1, %s829_s24  }
 0x292   : > { %s624_s16 = scalar_lea.sflag [#allocation3], %s623_s17 }
 0x293   : > { %p743_p2 = pnand %p746_p1, %p928_p6 }
 0x295   : > { %p744_p3 = pneg %p743_p2 }
 0x297   : > { %824 = dma.done.wait (%p744_p3), %s624_s16, 256  }
 0x298   : > { %826 = vsyncadd (%p744_p3), %s624_s16, 4294967040  ;;  %p17_p4 = scmp.ge.s32.totalorder %s911_s30, 4   ;;  %s1059_s24 = smov %s833_s25 }
 0x299   : > { %s1060_s25 = smov %s837_s26  ;;  %s1061_s26 = smov %s922_s10 }
 0x29a   : > { %s1062_s27 = smov %s911_s30  ;;  %19 = sbr.rel (!%p17_p4) target bundleno = 3 (0x3), region = 83 }
 0x29f   :  { %629 = vsyncpa [#allocation3], 1 }
 0x2a0   :  { %631 = vsyncpa [#allocation3 + $0x1], 1 }

// kernel: tpu_custom_call.1
= control target key start
LH: loop header
LB: loop body
LE: loop exit
PB: predicated region body
PF: predicated region fallthrough
CT: control target
= control target key end

     0   :  { %12 = vsyncpa [#allocation3], 0  ;;  %s1049_s0 = inlined_call_operand.vmem [shape: f32[24,48], index: 0, kind: input, shape index: {}]   ;;  %s1050_s1 = inlined_call_operand.vmem [shape: f32[48,16], index: 1, kind: input, shape index: {}]   ;;  %s1051_s2 = inlined_call_operand.vmem [shape: f32[1,16], index: 2, kind: input, shape index: {}]   ;;  %s1052_s3 = inlined_call_operand.vmem [shape: f32[16,16], index: 3, kind: input, shape index: {}]   ;;  %s1053_s4 = inlined_call_operand.vmem [shape: f32[1,16], index: 4, kind: input, shape index: {}]   ;;  %s1054_s5 = inlined_call_operand.vmem [shape: f32[16,48], index: 5, kind: input, shape index: {}]   ;;  %s1055_s6 = inlined_call_operand.vmem [shape: f32[1,48], index: 6, kind: input, shape index: {}]   ;;  %s1056_s7 = inlined_call_operand.hbm [shape: f32[24,48], index: 7, kind: output, shape index: {}]  }
   0x1   :  { %14 = vsyncpa [#allocation3 + $0x1], 0  ;;  %s886_s24 = smov 0   ;;  %s888_s25 = smov 0  }
   0x2   :  { %s890_s26 = smov 0   ;;  %s892_s27 = smov 0  }
   0x3 LB: > { %s907_s28 = sadd.s32 4294967295, %s841_s27   ;;  %s670_s29 = sadd.s32 4294967294, %s841_s27   ;;  %s841_s27 = sphi %s892_s27, %s1062_s27   ;;  %s837_s26 = sphi %s890_s26, %s1061_s26   ;;  %s833_s25 = sphi %s888_s25, %s1060_s25   ;;  %s829_s24 = sphi %s886_s24, %s1059_s24  }
   0x4   : > { %s911_s30 = sadd.s32 1, %s841_s27   ;;  %s179_s8 = sadd.s32 1, %s837_s26 }
   0x5   : > { %s176_s9 = ssub.s32 %s841_s27, %s911_s30  ;;  %p189_p0 = scmp.ne.s32.totalorder %s837_s26, %s833_s25 }
   0x6   : > { %p177_p1 = scmp.eq.s32.totalorder %s176_s9, 0  ;;  %p190_p2 = scmp.eq.s32.totalorder %s907_s28, 1 }
   0x7   : > { %p195_p3 = scmp.ne.s32.totalorder %s833_s25, %s829_s24  ;;  %p196_p4 = scmp.eq.s32.totalorder %s670_s29, 1 }
   0x8   : > { %s922_s10 = scalar_select %p177_p1, %s837_s26, %s179_s8  }
   0x9   : > { %p924_p5 = por %p190_p2, %p189_p0  ;;  %p928_p6 = por %p196_p4, %p195_p3 }
   0xa   : > { %p673_p7 = scmp.ge.s32.totalorder %s841_s27, 1  ;;  %p249_p8 = scmp.lt.s32.totalorder %s841_s27, 3 }
   0xc   : > { %p250_p9 = pnand %p673_p7, %p249_p8 }
   0xd   : > { %s941_s17 = sshll.u32 (!%p250_p9), %s907_s28, 1  ;;  %s282_s16 = sand.u32 (!%p250_p9), 1, %s833_s25  }
   0xe   : > { %253 = sbr.rel (%p250_p9) target bundleno = 657 (0x291), region = 48  ;;  %p290_p10 = scmp.lt.s32.totalorder (!%p250_p9), %s941_s17, 2 }
   0xf   : > { %s674_s18 = sshll.u32 (!%p250_p9), %s282_s16, 4  ;;  %s990_s22 = scalar_lea.sflag (!%p250_p9), [#allocation3], %s282_s16 }
  0x10   : > { %s284_s21 = scalar_lea.vmem (!%p250_p9), [#allocation2], %s674_s18 }
  0x13   : > { %v311_v0 = vld [vmem:[%s1050_s1 + $0x28] sm:$0xff]  ;;  %v310_v1 = vld [vmem:[%s1050_s1 + $0x20] sm:$0xff]  ;;  %v309_v2 = vld [vmem:[%s1050_s1 + $0x18] sm:$0xff]  ;;  %s291_s20 = scalar_select %p290_p10, %s941_s17, 2  ;;  %vm319_vm0 = vcmask 392192   ;;  %vm412_vm1 = vcmask 130048  }
  0x14   : > { %712 = vmatprep.subr.mxu0 %v311_v0  ;;  %v308_v3 = vld [vmem:[%s1050_s1 + $0x10] sm:$0xff]  ;;  %v307_v4 = vld [vmem:[%s1050_s1 + $0x8] sm:$0xff]  ;;  %v306_v6 = vld [vmem:[%s1050_s1] sm:$0xff] }
  0x15   : > { %713 = vmatpush3.msra.mxu0 %v311_v0  ;;  %s676_s23 = sshll.u32 %s291_s20, 3  ;;  %v404_v8 = vld [vmem:[%s1052_s3 + $0x8] sm:$0xff]  ;;  %v403_v9 = vld [vmem:[%s1052_s3] sm:$0xff] }
  0x16   : > { %714 = vmatprep.subr.mxu0 %v310_v1  ;;  %s293_s14 = scalar_lea.vmem %s1049_s0, %s676_s23  ;;  %727 = vmatprep.subr.mxu1 %v404_v8  ;;  %v677_v10 = vld [vmem:[%s1051_s2] ss:$0 sm:$0xff]  ;;  %v497_v17 = vld [vmem:[%s1054_s5 + $0x8] sm:$0xff]  ;;  %s597_s23 = ssub.s32 (%p924_p5), 3, %s941_s17 }
  0x17   : > { %715 = vmatpush3.msra.mxu0 %v310_v1  ;;  %v304_v5 = vld [vmem:[%s293_s14] sm:$0xff]  ;;  %v305_v7 = vld [vmem:[%s293_s14 + $0x8] sm:$0xff]  ;;  %728 = vmatpush3.msra.mxu1 %v404_v8  ;;  %p598_p11 = scmp.lt.s32.totalorder (%p924_p5), %s597_s23, 2 }
  0x18   : > { %716 = vmatprep.subr.mxu0 %v309_v2  ;;  %724 = vmatprep.mubr.msk.f32.mxu0 %vm319_vm0, %v304_v5  ;;  %v496_v18 = vld [vmem:[%s1054_s5] sm:$0xff] }
  0x19   : > { %717 = vmatpush3.msra.mxu0 %v309_v2  ;;  %729 = vmatprep.subr.mxu1 %v403_v9  ;;  %v680_v19 = vld [vmem:[%s1053_s4] ss:$0 sm:$0xff] }
  0x1a   : > { %718 = vmatprep.subr.mxu0 %v308_v3  ;;  %730 = vmatpush3.msra.mxu1 %v403_v9  ;;  %v683_v26 = vld [vmem:[%s1055_s6] ss:$0 sm:$0xff] }
  0x1b   : > { %719 = vmatpush3.msra.mxu0 %v308_v3  ;;  %734 = vmatprep.subr.mxu1 %v497_v17 }
  0x1c   : > { %720 = vmatprep.subr.mxu0 %v307_v4 }
  0x1d   : > { %721 = vmatpush3.msra.mxu0 %v307_v4 }
  0x1e   : > { %722 = vmatprep.subr.mxu0 %v306_v6 }
  0x1f   : > { %723 = vmatpush3.msra.mxu0 %v306_v6 }
  0x20   : > { %725 = vmatmul.mubr.msk.f32.vlgmr.msra.gmra.mxu0 %vm319_vm0, %v305_v7 }
  0xe0   : > { %v726_v11 = vpop.f32.mrf.mxu0 }
  0xe1   : > { %v398_v12 = vadd.f32 %v726_v11, %v677_v10 }
  0xe2   : > { %v392_v13 = vpop.f32.mrf.mxu0 }
  0xe3   : > { %v393_v14 = vadd.f32 %v677_v10, %v392_v13  ;;  %v402_v16 = vmax.f32 %v398_v12, 0.0 }
  0xe5   : > { %v401_v15 = vmax.f32 %v393_v14, 0.0 }
  0xe7   : > { %731 = vmatprep.mubr.msk.f32.mxu1 %vm412_vm1, %v401_v15 }
  0xe8   : > { %732 = vmatmul.mubr.msk.f32.vlgmr.msra.gmra.mxu1 %vm412_vm1, %v402_v16 }
  0xe9   : > { %735 = vmatpush3.msra.mxu1 %v497_v17 }
  0xea   : > { %736 = vmatprep.subr.mxu1 %v496_v18 }
  0xeb   : > { %737 = vmatpush3.msra.mxu1 %v496_v18 }
 0x1a8   : > { %v733_v20 = vpop.f32.mrf.mxu1 }
 0x1a9   : > { %v491_v21 = vadd.f32 %v733_v20, %v680_v19 }
 0x1aa   : > { %v485_v22 = vpop.f32.mrf.mxu1 }
 0x1ab   : > { %v486_v23 = vadd.f32 %v680_v19, %v485_v22  ;;  %v495_v25 = vmax.f32 %v491_v21, 0.0 }
 0x1ad   : > { %v494_v24 = vmax.f32 %v486_v23, 0.0 }
 0x1af   : > { %738 = vmatprep.mubr.msk.f32.mxu1 %vm412_vm1, %v494_v24 }
 0x1b0   : > { %739 = vmatmul.mubr.msk.f32.vlgmr.msra.gmra.mxu1 %vm412_vm1, %v495_v25 }
 0x270   : > { %v740_v27 = vpop.f32.mrf.mxu1 }
 0x271   : > { %v583_v28 = vadd.f32 %v740_v27, %v683_v26  ;;  %595 = sbr.rel (!%p924_p5) target bundleno = 657 (0x291), region = 52 }
 0x272   : > { %v577_v29 = vpop.f32.mrf.mxu1 }
 0x273   : > { %587 = vst.msk [vmem:[%s284_s21 + $0x8] sm:$0xff] %vm319_vm0, %v583_v28  ;;  %v578_v30 = vadd.f32 %v683_v26, %v577_v29 }
 0x275   : > { %586 = vst.msk [vmem:[%s284_s21] sm:$0xff] %vm319_vm0, %v578_v30 }
 0x276   : > { %s1064_s23 = smov (!%p598_p11, %s597_s23), 2 }
 0x277   : > { %s995_s29 = sshll.u32 %s1064_s23, 7 }
 0x278   : > { %s602_s8 = ssub.s32 256, %s995_s29 }
 0x279   : > { %603 = vsyncadd %s990_s22, %s602_s8  ;;  %p689_p12 = scmp.ne.s32.totalorder %s995_s29, 0  ;;  %s695_s9 = sshll.u32 %s907_s28, 8 }
 0x27a   : > { %s1004_s11 = scalar_lea.hbm %s1056_s7, %s695_s9  ;;  %s608_s15 = sshll.u32 %s284_s21, 4  ;;  %s1006_s15 = int_to_ptr.vmem [resolvable:$true] %s608_s15 }
 0x27b   : > { %s781_s17 = scalar_lea.vmem %s1006_s15, %s995_s29  ;;  %s843_s16 = smov [#allocation2]  }
 0x27c   : > { %p782_p13 = scmp.ne.s32.totalorder %s1006_s15, %s781_s17  ;;  %s785_s18 = sshll.u32 %s843_s16, 4  ;;  %s786_s18 = int_to_ptr.vmem [resolvable:$false] %s785_s18 }
 0x27d   : > { %s787_s28 = scalar_lea.vmem %s786_s18, 512  ;;  %p788_p2 = scmp.lt.s32.totalorder %s1006_s15, %s786_s18 }
 0x27e   : > { %p783_p0 = pnand %p782_p13, %p689_p12  ;;  %p789_p3 = scmp.lt.s32.totalorder %s787_s28, %s781_s17 }
 0x280   : > { %p784_p1 = pneg %p783_p0  ;;  %p790_p4 = por %p789_p3, %p788_p2 }
 0x282   : > { %p791_p5 = pnand %p790_p4, %p784_p1 }
 0x284   : > { %794 = shalt.err (!%p791_p5)
}
 0x285   : > { %s795_s19 = scalar_lea.hbm %s1004_s11, %s995_s29  ;;  %s799_s23 = scalar_lea.hbm %s1056_s7, 384 }
 0x286   : > { %p796_p7 = scmp.ne.s32.totalorder %s1004_s11, %s795_s19  ;;  %p800_p10 = scmp.lt.s32.totalorder %s1004_s11, %s1056_s7 }
 0x287   : > { %p801_p11 = scmp.lt.s32.totalorder %s799_s23, %s795_s19 }
 0x288   : > { %p797_p8 = pnand %p796_p7, %p689_p12 }
 0x289   : > { %p802_p13 = por %p801_p11, %p800_p10 }
 0x28a   : > { %p798_p9 = pneg %p797_p8 }
 0x28c   : > { %p803_p0 = pnand %p802_p13, %p798_p9 }
 0x28e   : > { %806 = shalt.err (!%p803_p0)
}
 0x28f   : > { %s844_s13 = smov 128   ;;  %s845_s14 = smov 8  }
 0x290   : > { %614 = dma.vmem_to_hbm [thread:$0]  (%p689_p12), %s1006_s15, %s995_s29, %s1004_s11, %s990_s22, %s844_s13, %s844_s13, %s845_s14  }
 0x291 PF: > { %p746_p1 = scmp.ge.s32.totalorder %s841_s27, 2  ;;  %s623_s17 = sand.u32 1, %s829_s24  }
 0x292   : > { %s624_s16 = scalar_lea.sflag [#allocation3], %s623_s17 }
 0x293   : > { %p743_p2 = pnand %p746_p1, %p928_p6 }
 0x295   : > { %p744_p3 = pneg %p743_p2 }
 0x297   : > { %824 = dma.done.wait (%p744_p3), %s624_s16, 256  }
 0x298   : > { %826 = vsyncadd (%p744_p3), %s624_s16, 4294967040  ;;  %p17_p4 = scmp.ge.s32.totalorder %s911_s30, 4   ;;  %s1059_s24 = smov %s833_s25 }
 0x299   : > { %s1060_s25 = smov %s837_s26  ;;  %s1061_s26 = smov %s922_s10 }
 0x29a   : > { %s1062_s27 = smov %s911_s30  ;;  %19 = sbr.rel (!%p17_p4) target bundleno = 3 (0x3), region = 83 }
 0x29f   :  { %629 = vsyncpa [#allocation3], 1 }
 0x2a0   :  { %631 = vsyncpa [#allocation3 + $0x1], 1 }

</bundles_post_ra>
